<compile_context>
chip_gen: v7x
topology: tpu7x:2x2x1
jax: 0.10.0
libtpu: 0.0.40
codegen_flags: <defaults>
</compile_context>

<pallas_src>
import math

import jax
import jax.numpy as jnp
from jax.experimental import pallas as pl
from jax.experimental.pallas import tpu as pltpu


# ----------------------------------------------------------------------------
# Pallas kernel
# ----------------------------------------------------------------------------
def pos_enc_kernel(x_ref, pe_ref, o_ref):
    """x_ref / o_ref: (B, ts, D) slab; pe_ref: (ts, D) shared sinusoidal tile."""
    pe = pe_ref[...]                                   # f32 table tile
    # Compute the add at the table precision (matches torch's type promotion),
    # then store in the activation dtype. The cast is free VPU work in a
    # memory-bound kernel.
    o_ref[...] = (x_ref[...].astype(pe.dtype) + pe[None]).astype(o_ref.dtype)
    # TODO(synk): training-mode dropout (p=0.1) would need a per-call seed plus
    # pltpu.prng_seed / pltpu.prng_random_bits; eval-mode dropout is identity.


# ----------------------------------------------------------------------------
# Tiling helpers
# ----------------------------------------------------------------------------
def _sublane_rows(dtype):
    """Sublane alignment: 8 rows for 4-byte, 16 for 2-byte, 32 for 1-byte."""
    return max(8, 32 // jnp.dtype(dtype).itemsize)


def _pick_seq_tile(B, S_pad, D, itemsize, sub, budget_bytes=2 << 20):
    """Largest sequence tile ts such that:
      * ts divides S_pad and is a multiple of the sublane alignment,
      * the (B, ts, D) x-tile stays within ~budget_bytes (keeps the
        double-buffered working set well under every generation's scoped
        VMEM default),
      * when the sequence allows it, S_pad // ts >= 2 so a 'parallel' grid
        axis has at least 2 steps (both v7x TensorCores get work).
    S_pad is a multiple of `sub`, so `sub` itself always qualifies.
    """
    max_rows = max(sub, (budget_bytes // max(1, B * D * itemsize)) // sub * sub)
    cap = min(max_rows, S_pad // 2 if S_pad >= 2 * sub else S_pad)
    cap = max(sub, (cap // sub) * sub)
    t = cap
    while t >= sub:
        if S_pad % t == 0:
            return t
        t -= sub
    return sub


# ----------------------------------------------------------------------------
# Wrapper
# ----------------------------------------------------------------------------
def positional_encoding(x, pe_table, *, donate_x=False):
    """out = x + pe_table[:S] broadcast over batch; dropout = identity (eval).

    `pe_table` is the full (max_len, d_model) f32 buffer — it is NOT sliced or
    cast in the wrapper; the PE BlockSpec only ever touches its first S rows.
    """
    B, S, D = x.shape
    max_len, d_model = pe_table.shape
    assert d_model == D, "d_model mismatch between x and PE table"
    assert max_len >= S, "sequence longer than positional-encoding table"

    sub = _sublane_rows(x.dtype)
    S_pad = pl.cdiv(S, sub) * sub

    xp = x
    pe = pe_table
    if S_pad != S:
        # Awkward sequence length: pad (instead of an unbounded full-S tile).
        xp = jnp.pad(x, ((0, 0), (0, S_pad - S), (0, 0)))
        if S_pad > max_len:
            pe = jnp.pad(pe_table, ((0, S_pad - max_len), (0, 0)))

    ts = _pick_seq_tile(B, S_pad, D, x.dtype.itemsize, sub)
    n_s = S_pad // ts

    out = pl.pallas_call(
        pos_enc_kernel,
        out_shape=jax.ShapeDtypeStruct((B, S_pad, D), x.dtype),
        grid=(n_s,),                                      # 1-D grid over sequence tiles
        in_specs=[
            pl.BlockSpec((B, ts, D), lambda s: (0, s, 0)),   # x slab (batch folded in)
            pl.BlockSpec((ts, D),    lambda s: (s, 0)),      # shared PE tile, DMA'd once
        ],
        out_specs=pl.BlockSpec((B, ts, D), lambda s: (0, s, 0)),
        compiler_params=pltpu.CompilerParams(
            dimension_semantics=("parallel",)),
        input_output_aliases=({0: 0} if donate_x else {}),
    )(xp, pe)

    return out if S_pad == S else out[:, :S, :]


# ----------------------------------------------------------------------------
# Sinusoidal PE table (matches the torch module's registered buffer)
# ----------------------------------------------------------------------------
def make_pe_table(max_len, d_model):
    position = jnp.arange(max_len, dtype=jnp.float32)[:, None]
    div_term = jnp.exp(jnp.arange(0, d_model, 2, dtype=jnp.float32)
                       * (-math.log(10000.0) / d_model))
    pe = jnp.zeros((max_len, d_model), jnp.float32)
    pe = pe.at[:, 0::2].set(jnp.sin(position * div_term))
    pe = pe.at[:, 1::2].set(jnp.cos(position * div_term))
    return pe


# ----------------------------------------------------------------------------
if __name__ == "__main__":
    B, S, D = 2, 64, 256          # lane-dense D (multiple of 128), S multiple of 8
    MAX_LEN = 128

    key = jax.random.PRNGKey(0)
    x = jax.random.normal(key, (B, S, D), jnp.float32)
    pe_table = make_pe_table(MAX_LEN, D)

    out = jax.block_until_ready(positional_encoding(x, pe_table))
    ref = x + pe_table[None, :S, :]
    assert out.shape == (B, S, D)
    assert jnp.all(jnp.isfinite(out))
    assert jnp.allclose(out, ref, atol=1e-6, rtol=1e-6), \
        f"max abs err {float(jnp.max(jnp.abs(out - ref)))}"

    # Exercise the padded (awkward sequence length) path as well.
    S2 = 60
    x2 = jax.random.normal(jax.random.PRNGKey(1), (B, S2, D), jnp.float32)
    out2 = jax.block_until_ready(positional_encoding(x2, pe_table))
    ref2 = x2 + pe_table[None, :S2, :]
    assert out2.shape == (B, S2, D)
    assert jnp.allclose(out2, ref2, atol=1e-6, rtol=1e-6), \
        f"max abs err {float(jnp.max(jnp.abs(out2 - ref2)))}"

    print("KERNEL_OK")
</pallas_src>

<mosaic_0001>
module attributes {stable_mosaic.version = 11 : i64} {
  func.func @pos_enc_kernel(%arg0: i32, %arg1: memref<2x32x256xf32, #tpu.memory_space<vmem>>, %arg2: memref<32x256xf32, #tpu.memory_space<vmem>>, %arg3: memref<2x32x256xf32, #tpu.memory_space<vmem>>) attributes {dimension_semantics = [#tpu.dimension_semantics<parallel>], iteration_bounds = array<i64: 2>, scalar_prefetch = 0 : i64, scratch_operands = 0 : i64, tpu.core_type = #tpu.core_type<tc>, window_params = [{transform_indices = @transform_0, window_bounds = array<i64: 2, 32, 256>}, {transform_indices = @transform_1, window_bounds = array<i64: 32, 256>}, {transform_indices = @transform_2, window_bounds = array<i64: 2, 32, 256>}]} {
    %c0 = arith.constant 0 : index
    %c0_0 = arith.constant 0 : index
    %0 = vector.load %arg2[%c0, %c0_0] : memref<32x256xf32, #tpu.memory_space<vmem>>, vector<32x256xf32>
    %c0_1 = arith.constant 0 : index
    %c0_2 = arith.constant 0 : index
    %c0_3 = arith.constant 0 : index
    %1 = vector.load %arg1[%c0_1, %c0_2, %c0_3] : memref<2x32x256xf32, #tpu.memory_space<vmem>>, vector<2x32x256xf32>
    %2 = vector.shape_cast %0 : vector<32x256xf32> to vector<1x32x256xf32>
    %3 = vector.broadcast %2 : vector<1x32x256xf32> to vector<2x32x256xf32>
    %4 = arith.addf %1, %3 : vector<2x32x256xf32>
    %c0_4 = arith.constant 0 : index
    %c0_5 = arith.constant 0 : index
    %c0_6 = arith.constant 0 : index
    %5 = vector.load %arg3[%c0_4, %c0_5, %c0_6] : memref<2x32x256xf32, #tpu.memory_space<vmem>>, vector<2x32x256xf32>
    tpu.vector_store %arg3[%c0_4, %c0_5, %c0_6], %4 {strides = array<i32>} : memref<2x32x256xf32, #tpu.memory_space<vmem>>, vector<2x32x256xf32>,
    return
  }
  func.func @transform_0(%arg0: i32) -> (i32, i32, i32) {
    %c0_i32 = arith.constant 0 : i32
    %c0_i32_0 = arith.constant 0 : i32
    %c0_i32_1 = arith.constant 0 : i32
    return %c0_i32, %arg0, %c0_i32_0 : i32, i32, i32
  }
  func.func @transform_1(%arg0: i32) -> (i32, i32) {
    %c0_i32 = arith.constant 0 : i32
    %c0_i32_0 = arith.constant 0 : i32
    return %arg0, %c0_i32 : i32, i32
  }
  func.func @transform_2(%arg0: i32) -> (i32, i32, i32) {
    %c0_i32 = arith.constant 0 : i32
    %c0_i32_0 = arith.constant 0 : i32
    %c0_i32_1 = arith.constant 0 : i32
    return %c0_i32, %arg0, %c0_i32_0 : i32, i32, i32
  }
}

</mosaic_0001>

<bundles_post_ra>
// kernel: tpu_custom_call.1
= control target key start
LH: loop header
LB: loop body
LE: loop exit
PB: predicated region body
PF: predicated region fallthrough
CT: control target
= control target key end

     0   :  { %7 = vsyncpa [#allocation3], 0  ;;  %s838_s0 = inlined_call_operand.hbm [shape: f32[2,64,256], index: 0, kind: input, shape index: {}]   ;;  %s839_s1 = inlined_call_operand.hbm [shape: f32[128,256], index: 1, kind: input, shape index: {}]   ;;  %s840_s2 = inlined_call_operand.hbm [shape: f32[2,64,256], index: 2, kind: output, shape index: {}]  }
   0x1   :  { %9 = vsyncpa [#allocation3 + $0x1], 0 }
   0x2   :  { %10 = vsyncpa [#allocation6], 0 }
   0x3   :  { %12 = vsyncpa [#allocation6 + $0x1], 0 }
   0x4   :  { %13 = vsyncpa [#allocation4], 0 }
   0x5   :  { %15 = vsyncpa [#allocation4 + $0x1], 0  ;;  %s631_s9 = smov 0   ;;  %s633_s10 = smov 0  }
   0x6   :  { %s635_s11 = smov 0   ;;  %s637_s12 = smov 0  }
   0x7 LB: > { %s652_s13 = sadd.s32 4294967295, %s598_s12   ;;  %s428_s14 = sadd.s32 4294967294, %s598_s12   ;;  %s598_s12 = sphi %s637_s12, %s853_s12   ;;  %s594_s11 = sphi %s635_s11, %s852_s11   ;;  %s590_s10 = sphi %s633_s10, %s851_s10   ;;  %s586_s9 = sphi %s631_s9, %s850_s9  }
   0x8   : > { %s656_s15 = sadd.s32 1, %s598_s12   ;;  %s28_s16 = sadd.s32 1, %s594_s11 }
   0x9   : > { %s25_s17 = ssub.s32 %s598_s12, %s656_s15  ;;  %p35_p0 = scmp.ne.s32.totalorder %s594_s11, %s590_s10 }
   0xa   : > { %p26_p1 = scmp.eq.s32.totalorder %s25_s17, 0  ;;  %p36_p2 = scmp.eq.s32.totalorder %s598_s12, 0 }
   0xb   : > { %p41_p3 = scmp.ne.s32.totalorder %s590_s10, %s586_s9  ;;  %p42_p4 = scmp.eq.s32.totalorder %s652_s13, 0 }
   0xc   : > { %s668_s18 = scalar_select %p26_p1, %s594_s11, %s28_s16  }
   0xd   : > { %p670_p5 = por %p36_p2, %p35_p0  ;;  %p674_p6 = por %p42_p4, %p41_p3 }
   0xe   : > { %p91_p7 = scmp.eq.s32.totalorder %s652_s13, 1  ;;  %p97_p8 = scmp.eq.s32.totalorder %s428_s14, 1 }
   0xf   : > { %p841_p11 = scmp.ge.s32.totalorder %s598_s12, 2 }
  0x10   : > { %p679_p9 = por %p91_p7, %p35_p0  ;;  %p683_p10 = por %p97_p8, %p41_p3 }
  0x11   : > { %113 = sbr.rel (%p841_p11) target bundleno = 62 (0x3e), region = 16 }
  0x12   : > { %s845_s21 = scalar_select %p679_p9, 1, 0 }
  0x13   : > { %s846_s22 = scalar_select %p683_p10, 1, 0 }
  0x18   : > { %s691_s23 = sand.u32 1, %s594_s11   ;;  %s452_s24 = sshll.u32 %s598_s12, 10 }
  0x19   : > { %s431_s25 = sshll.u32 %s691_s23, 7  ;;  %s128_s28 = scalar_lea.hbm %s838_s0, %s452_s24 }
  0x1a   : > { %s457_s29 = scalar_select %p670_p5, [#allocation0], [#allocation12] }
  0x1b   : > { %s121_s30 = scalar_lea.vmem [#allocation2], %s431_s25  ;;  %s600_s5 = smov 2048  }
  0x1c   : > { %s141_s3 = sshll.u32 %s121_s30, 4  ;;  %s133_s4 = sld [smem:[%s457_s29]]   ;;  %s142_s3 = int_to_ptr.vmem [resolvable:$true] %s141_s3 }
  0x1d   : > { %458 = sst [smem:[#allocation9]] (%p670_p5), %s600_s5  ;;  %s601_s6 = smov 1024  }
  0x1e   : > { %459 = sst [smem:[#allocation9 + $0x1]] (%p670_p5), %s601_s6  ;;  %s602_s7 = smov 4  }
  0x1f   : > { %460 = sst [smem:[#allocation9 + $0x2]] (%p670_p5), %s602_s7  ;;  %s603_s8 = smov 256  }
  0x20   : > { %461 = sst [smem:[#allocation9 + $0x3]] (%p670_p5), %s603_s8  ;;  %s604_s16 = smov 16  }
  0x21   : > { %462 = sst [smem:[#allocation9 + $0x4]] (%p670_p5), %s603_s8  ;;  %s118_s25 = scalar_lea.sflag [#allocation3], %s691_s23 }
  0x22   : > { %s435_s14 = sshll.u32 %s133_s4, 26  ;;  %463 = sst [smem:[#allocation9 + $0x5]] (%p670_p5), %s604_s16 }
  0x23   : > { %s436_s17 = sadd.s32 134217728, %s435_s14  ;;  %s605_s26 = smov [#allocation8]  }
  0x24   : > { %464 = dma.general (%p670_p5), %s128_s28, 2048, %s142_s3, %s118_s25, %s605_s26, [#allocation9], %s436_s17, 0  }
  0x25   : > { %s437_s27 = sshll.u32 %s691_s23, 6  ;;  %s719_s5 = scalar_lea.hbm %s839_s1, %s452_s24 }
  0x26   : > { %s168_s4 = scalar_lea.vmem [#allocation5], %s437_s27  ;;  %s165_s7 = scalar_lea.sflag [#allocation6], %s691_s23 }
  0x27   : > { %s176_s6 = sshll.u32 %s168_s4, 4  ;;  %s528_s8 = scalar_lea.hbm %s719_s5, 1024  ;;  %s721_s6 = int_to_ptr.vmem [resolvable:$true] %s176_s6 }
  0x28   : > { %p529_p12 = scmp.ne.s32.totalorder %s719_s5, %s528_s8  ;;  %s532_s14 = scalar_lea.hbm %s839_s1, 4096 }
  0x29   : > { %p533_p1 = scmp.lt.u32.totalorder %s719_s5, %s839_s1  ;;  %p534_p2 = scmp.lt.u32.totalorder %s532_s14, %s528_s8 }
  0x2a   : > { %p530_p13 = pnand %p529_p12, %p670_p5  ;;  %p536_p4 = scmp.lt.u32.totalorder %s528_s8, %s719_s5 }
  0x2b   : > { %p535_p3 = por %p534_p2, %p533_p1 }
  0x2c   : > { %p531_p0 = pneg %p530_p13 }
  0x2d   : > { %p537_p7 = por %p536_p4, %p535_p3 }
  0x2f   : > { %p538_p8 = pnand %p537_p7, %p531_p0 }
  0x31   : > { %541 = shalt.err (!%p538_p8)
}
  0x32   : > { %s542_s17 = scalar_lea.vmem %s721_s6, 1024  ;;  %s606_s25 = smov [#allocation5]  }
  0x33   : > { %p543_p12 = scmp.ne.s32.totalorder %s721_s6, %s542_s17  ;;  %s546_s26 = sshll.u32 %s606_s25, 4  ;;  %s547_s26 = int_to_ptr.vmem [resolvable:$false] %s546_s26 }
  0x34   : > { %s548_s27 = scalar_lea.vmem %s547_s26, 2048  ;;  %p549_p10 = scmp.lt.s32.totalorder %s721_s6, %s547_s26 }
  0x35   : > { %p544_p13 = pnand %p543_p12, %p670_p5  ;;  %p550_p9 = scmp.lt.s32.totalorder %s548_s27, %s542_s17 }
  0x37   : > { %p545_p11 = pneg %p544_p13  ;;  %p551_p1 = por %p550_p9, %p549_p10 }
  0x39   : > { %p552_p2 = pnand %p551_p1, %p545_p11 }
  0x3b   : > { %555 = shalt.err (!%p552_p2)
}
  0x3c   : > { %s607_s29 = smov 256   ;;  %s608_s30 = smov 16  }
  0x3d   : > { %465 = dma.hbm_to_vmem [thread:$0]  (%p670_p5), %s719_s5, 1024, %s721_s6, %s165_s7, %s607_s29, %s607_s29, %s608_s30  }
  0x3e PF: > { %p441_p0 = scmp.ge.s32.totalorder %s598_s12, 1  ;;  %p184_p3 = scmp.lt.s32.totalorder %s598_s12, 3 }
  0x40   : > { %p185_p4 = pnand %p441_p0, %p184_p3 }
  0x41   : > { %s750_s4 = sand.u32 (!%p185_p4), 1, %s590_s10  }
  0x42   : > { %188 = sbr.rel (%p185_p4) target bundleno = 102 (0x66), region = 28  ;;  %s442_s8 = sshll.u32 (!%p185_p4), %s750_s4, 7 }
  0x43   : > { %s191_s28 = scalar_lea.sflag (!%p185_p4), [#allocation3], %s750_s4  ;;  %s754_s3 = scalar_lea.vmem (!%p185_p4), [#allocation2], %s442_s8 }
  0x49   : > { %573 = dma.done.wait (%p674_p6), %s191_s28, 2048  }
  0x4a   : > { %575 = vsyncadd (%p674_p6), %s191_s28, 4294965248  ;;  %s443_s19 = sshll.u32 %s750_s4, 6  ;;  %s200_s23 = scalar_lea.sflag [#allocation6], %s750_s4 }
  0x4b   : > { %s203_s5 = scalar_lea.vmem [#allocation5], %s443_s19 }
  0x4c   : > { %577 = dma.done.wait (%p674_p6), %s200_s23, 1024  }
  0x4d   : > { %579 = vsyncadd (%p674_p6), %s200_s23, 4294966272  ;;  %v232_v0 = vld [vmem:[%s203_s5] sm:$0xff]  ;;  %v233_v2 = vld [vmem:[%s203_s5 + $0x8] sm:$0xff]  ;;  %s770_s20 = scalar_lea.vmem [#allocation7], %s442_s8  ;;  %s289_s6 = scalar_lea.sflag [#allocation4], %s750_s4 }
  0x4e   : > { %v240_v1 = vld [vmem:[%s754_s3] sm:$0xff]  ;;  %v241_v4 = vld [vmem:[%s754_s3 + $0x8] sm:$0xff]  ;;  %v234_v5 = vld [vmem:[%s203_s5 + $0x10] sm:$0xff] }
  0x4f   : > { %v256_v3 = vadd.f32 %v240_v1, %v232_v0  ;;  %v242_v6 = vld [vmem:[%s754_s3 + $0x10] sm:$0xff]  ;;  %v257_v7 = vadd.f32 %v241_v4, %v233_v2  ;;  %v235_v9 = vld [vmem:[%s203_s5 + $0x18] sm:$0xff]  ;;  %v236_v11 = vld [vmem:[%s203_s5 + $0x20] sm:$0xff] }
  0x50   : > { %v258_v8 = vadd.f32 %v242_v6, %v234_v5  ;;  %v243_v10 = vld [vmem:[%s754_s3 + $0x18] sm:$0xff]  ;;  %v244_v13 = vld [vmem:[%s754_s3 + $0x20] sm:$0xff]  ;;  %v237_v14 = vld [vmem:[%s203_s5 + $0x28] sm:$0xff] }
  0x51   : > { %272 = vst [vmem:[%s770_s20] sm:$0xff] %v256_v3  ;;  %v259_v12 = vadd.f32 %v243_v10, %v235_v9  ;;  %v245_v15 = vld [vmem:[%s754_s3 + $0x28] sm:$0xff]  ;;  %273 = vst [vmem:[%s770_s20 + $0x8] sm:$0xff] %v257_v7  ;;  %v260_v16 = vadd.f32 %v244_v13, %v236_v11  ;;  %v238_v18 = vld [vmem:[%s203_s5 + $0x30] sm:$0xff] }
  0x52   : > { %274 = vst [vmem:[%s770_s20 + $0x10] sm:$0xff] %v258_v8  ;;  %v261_v17 = vadd.f32 %v245_v15, %v237_v14  ;;  %v246_v19 = vld [vmem:[%s754_s3 + $0x30] sm:$0xff]  ;;  %v239_v20 = vld [vmem:[%s203_s5 + $0x38] sm:$0xff]  ;;  %v248_v23 = vld [vmem:[%s754_s3 + $0x40] sm:$0xff] }
  0x53   : > { %275 = vst [vmem:[%s770_s20 + $0x18] sm:$0xff] %v259_v12  ;;  %v262_v21 = vadd.f32 %v246_v19, %v238_v18  ;;  %v247_v22 = vld [vmem:[%s754_s3 + $0x38] sm:$0xff]  ;;  %v249_v24 = vld [vmem:[%s754_s3 + $0x48] sm:$0xff]  ;;  %276 = vst [vmem:[%s770_s20 + $0x20] sm:$0xff] %v260_v16  ;;  %v264_v26 = vadd.f32 %v248_v23, %v232_v0 }
  0x54   : > { %277 = vst [vmem:[%s770_s20 + $0x28] sm:$0xff] %v261_v17  ;;  %v263_v25 = vadd.f32 %v247_v22, %v239_v20  ;;  %v265_v27 = vadd.f32 %v249_v24, %v233_v2  ;;  %v250_v28 = vld [vmem:[%s754_s3 + $0x50] sm:$0xff]  ;;  %v251_v29 = vld [vmem:[%s754_s3 + $0x58] sm:$0xff]  ;;  %v252_v30 = vld [vmem:[%s754_s3 + $0x60] sm:$0xff] }
  0x55   : > { %278 = vst [vmem:[%s770_s20 + $0x30] sm:$0xff] %v262_v21  ;;  %v266_v31 = vadd.f32 %v250_v28, %v234_v5  ;;  %v267_v32 = vadd.f32 %v251_v29, %v235_v9  ;;  %v268_v33 = vadd.f32 %v252_v30, %v236_v11  ;;  %v253_v34 = vld [vmem:[%s754_s3 + $0x68] sm:$0xff]  ;;  %v254_v35 = vld [vmem:[%s754_s3 + $0x70] sm:$0xff]  ;;  %v255_v36 = vld [vmem:[%s754_s3 + $0x78] sm:$0xff] }
  0x56   : > { %279 = vst [vmem:[%s770_s20 + $0x38] sm:$0xff] %v263_v25  ;;  %280 = vst [vmem:[%s770_s20 + $0x40] sm:$0xff] %v264_v26  ;;  %v269_v37 = vadd.f32 %v253_v34, %v237_v14  ;;  %v270_v38 = vadd.f32 %v254_v35, %v238_v18  ;;  %v271_v39 = vadd.f32 %v255_v36, %v239_v20 }
  0x57   : > { %281 = vst [vmem:[%s770_s20 + $0x48] sm:$0xff] %v265_v27  ;;  %282 = vst [vmem:[%s770_s20 + $0x50] sm:$0xff] %v266_v31 }
  0x58   : > { %283 = vst [vmem:[%s770_s20 + $0x58] sm:$0xff] %v267_v32  ;;  %284 = vst [vmem:[%s770_s20 + $0x60] sm:$0xff] %v268_v33 }
  0x59   : > { %285 = vst [vmem:[%s770_s20 + $0x68] sm:$0xff] %v269_v37  ;;  %286 = vst [vmem:[%s770_s20 + $0x70] sm:$0xff] %v270_v38 }
  0x5a   : > { %287 = vst [vmem:[%s770_s20 + $0x78] sm:$0xff] %v271_v39 }
  0x5b   : > { %s456_s7 = sshll.u32 %s652_s13, 10  ;;  %s319_s14 = sshll.u32 %s770_s20, 4  ;;  %s320_s14 = int_to_ptr.vmem [resolvable:$true] %s319_s14 }
  0x5c   : > { %s302_s17 = scalar_lea.hbm %s840_s2, %s456_s7  ;;  %s609_s25 = smov 1024  }
  0x5d   : > { %p847_p5 = scmp.ne.s32.totalorder %s845_s21, 0  ;;  %s610_s26 = smov 2048  }
  0x5e   : > { %s611_s27 = smov 4   ;;  %s612_s29 = smov 256  }
  0x5f   : > { %468 = sst [smem:[#allocation11]] (%p847_p5), %s609_s25  ;;  %s613_s13 = smov 16  }
  0x60   : > { %469 = sst [smem:[#allocation11 + $0x1]] (%p847_p5), %s610_s26  ;;  %s614_s30 = smov [#allocation10]  }
  0x61   : > { %470 = sst [smem:[#allocation11 + $0x2]] (%p847_p5), %s611_s27  ;;  %s615_s4 = smov 0  }
  0x62   : > { %471 = sst [smem:[#allocation11 + $0x3]] (%p847_p5), %s612_s29 }
  0x63   : > { %472 = sst [smem:[#allocation11 + $0x4]] (%p847_p5), %s612_s29 }
  0x64   : > { %473 = sst [smem:[#allocation11 + $0x5]] (%p847_p5), %s613_s13 }
  0x65   : > { %474 = dma.general (%p847_p5), %s320_s14, 2048, %s302_s17, %s289_s6, %s614_s30, [#allocation11], %s615_s4, 0  }
  0x66 PF: > { %s347_s8 = sand.u32 1, %s586_s9   ;;  %p848_p6 = scmp.ne.s32.totalorder %s846_s22, 0 }
  0x67   : > { %p849_p9 = scmp.ge.s32.totalorder %s598_s12, 2  ;;  %s348_s28 = scalar_lea.sflag [#allocation4], %s347_s8 }
  0x69   : > { %p477_p10 = pnand %p849_p9, %p848_p6 }
  0x6b   : > { %581 = dma.done.wait (!%p477_p10), %s348_s28, 2048  }
  0x6c   : > { %583 = vsyncadd (!%p477_p10), %s348_s28, 4294965248  ;;  %p18_p11 = scmp.ge.s32.totalorder %s656_s15, 4   ;;  %s850_s9 = smov %s590_s10 }
  0x6d   : > { %s851_s10 = smov %s594_s11  ;;  %s852_s11 = smov %s668_s18 }
  0x6e   : > { %s853_s12 = smov %s656_s15  ;;  %20 = sbr.rel (!%p18_p11) target bundleno = 7 (0x7), region = 96 }
  0x75   :  { %353 = vsyncpa [#allocation3], 1 }
  0x76   :  { %355 = vsyncpa [#allocation3 + $0x1], 1 }
  0x77   :  { %356 = vsyncpa [#allocation6], 1 }
  0x78   :  { %358 = vsyncpa [#allocation6 + $0x1], 1 }
  0x79   :  { %359 = vsyncpa [#allocation4], 1 }
  0x7a   :  { %361 = vsyncpa [#allocation4 + $0x1], 1 }

</bundles_post_ra>
